<compile_context>
chip_gen: v5e
topology: v5e:2x2
jax: 0.10.0
libtpu: 0.0.40
codegen_flags: <defaults>
</compile_context>

<pallas_src>
from functools import partial

import jax
import jax.numpy as jnp
from jax.experimental import pallas as pl
from jax.experimental.pallas import tpu as pltpu

_GELU_A = 0.7978845608028654          # sqrt(2/pi)
_GELU_B = _GELU_A * 0.044715          # sqrt(2/pi) * 0.044715 (folded coefficient)
_LANES = 128                          # lane-dense last dim -> unmasked vst
_ROW_CAP = 8192                       # 8192 x 128 f32 = 4 MiB tile
_ROW_MIN = 512                        # don't shrink below 256 KiB tiles


def _gelu_kernel(x_ref, o_ref, *, compute_dtype):
    # x_ref / o_ref: (tm, 128) tiles.
    x = x_ref[...].astype(compute_dtype)
    x2 = x * x
    # sqrt(2/pi)*(x + 0.044715*x^3) == x*(A + B*x^2)  (exact refactor)
    inner = x * (_GELU_A + _GELU_B * x2)
    # jnp.tanh lowers to a single EUP transcendental on TPU (free-ish slot).
    y = (0.5 * x) * (1.0 + jnp.tanh(inner))
    o_ref[...] = y.astype(o_ref.dtype)


def _pick_compute_dtype(dtype):
    """bf16 VALU/EUP exist on v6e/v7x; v5e (and older) need f32 math."""
    if dtype == jnp.bfloat16:
        try:
            kind = jax.devices()[0].device_kind.lower()
        except Exception:
            kind = ""
        if not any(v in kind for v in ("v2", "v3", "v4", "v5")):
            return jnp.bfloat16
    return jnp.float32


def gelu(x, *, tm=None):
    """tanh-approx GELU of a rank-3 tensor (b, T, d). Same shape/dtype out."""
    assert x.ndim == 3, "inputs rank must be 3, inputs.shape = (b, T, d)"
    orig_shape = x.shape
    dtype = x.dtype
    n = x.size

    # Lane-dense flat layout (rows, 128). If n % 128 == 0 this is a free
    # reshape: no pad, no trailing slice — zero extra HBM traffic.
    needs_pad = (n % _LANES) != 0
    if needs_pad:
        # TODO(synk): ragged sizes still pay one pad + one slice copy; a natural
        # (b*T, d) layout with masked lanes could avoid it when d >= 128.
        padded_n = pl.cdiv(n, 8 * _LANES) * (8 * _LANES)   # minimal (8,128) pad
        xf = jnp.pad(x.reshape(-1), (0, padded_n - n))
    else:
        padded_n = n
        xf = x.reshape(-1)
    rows = padded_n // _LANES
    x2d = xf.reshape(rows, _LANES)

    # Tile-height heuristic: aim for >=4 grid steps (pipelining + dual-TC work
    # on v7x) with tiles in the 0.25–4 MiB sweet spot; never exceed the array.
    rows8 = ((rows + 7) // 8) * 8                 # minimum legal tile height
    if tm is None:
        tm = max(_ROW_MIN, pl.cdiv(rows, 4))
    tm = max(8, ((min(tm, _ROW_CAP, rows8) + 7) // 8) * 8)
    grid_m = pl.cdiv(rows, tm)
    # Prefer an even number of grid steps so both v7x TensorCores stay busy.
    if grid_m > 1 and grid_m % 2 == 1:
        tm_even = ((pl.cdiv(rows, grid_m + 1) + 7) // 8) * 8
        if tm_even >= _ROW_MIN:
            tm = tm_even
            grid_m = pl.cdiv(rows, tm)

    compute_dtype = _pick_compute_dtype(dtype)

    # VMEM budget: double-buffered in + out tiles (input dtype) plus headroom
    # for f32 temporaries / compiler scratch. 16 MiB floor, 48 MiB cap (v7x).
    in_tile = tm * _LANES * jnp.dtype(dtype).itemsize
    f32_tile = tm * _LANES * 4
    vmem_limit = int(min(48 * 1024 * 1024,
                         max(16 * 1024 * 1024, 2 * 2 * in_tile + 4 * f32_tile)))

    out2d = pl.pallas_call(
        partial(_gelu_kernel, compute_dtype=compute_dtype),
        out_shape=jax.ShapeDtypeStruct((rows, _LANES), dtype),
        grid_spec=pltpu.PrefetchScalarGridSpec(
            num_scalar_prefetch=0,
            grid=(grid_m,),
            in_specs=[pl.BlockSpec((tm, _LANES), lambda i: (i, 0))],
            out_specs=pl.BlockSpec((tm, _LANES), lambda i: (i, 0)),
        ),
        compiler_params=pltpu.CompilerParams(
            dimension_semantics=("parallel",),   # megacore sharding on v7x
            vmem_limit_bytes=vmem_limit,
        ),
    )(x2d)

    if needs_pad:
        return out2d.reshape(-1)[:n].reshape(orig_shape)
    return out2d.reshape(orig_shape)


def _reference_gelu(x):
    x32 = x.astype(jnp.float32)
    y = 0.5 * x32 * (1.0 + jnp.tanh(jnp.sqrt(2.0 / jnp.pi) *
                                    (x32 + 0.044715 * x32 ** 3)))
    return y.astype(x.dtype)


if __name__ == "__main__":
    key = jax.random.PRNGKey(0)

    # Primary demo: rank-3 input as required by the module (n % 128 == 0 path).
    b, T, d = 2, 8, 32
    x = jax.random.normal(key, (b, T, d), dtype=jnp.float32)
    out = jax.block_until_ready(gelu(x))
    ref = _reference_gelu(x)
    assert out.shape == x.shape and out.dtype == x.dtype
    assert jnp.allclose(out, ref, atol=1e-5, rtol=1e-5)

    # Secondary check: ragged size (exercises the minimal-pad boundary path).
    x2 = jax.random.normal(jax.random.PRNGKey(1), (3, 7, 33), dtype=jnp.float32)
    out2 = jax.block_until_ready(gelu(x2))
    ref2 = _reference_gelu(x2)
    assert out2.shape == x2.shape and out2.dtype == x2.dtype
    assert jnp.allclose(out2, ref2, atol=1e-5, rtol=1e-5)

    print("KERNEL_OK")
</pallas_src>

<mosaic_0001>
module attributes {stable_mosaic.version = 11 : i64} {
  func.func @_gelu_kernel(%arg0: i32, %arg1: memref<8x128xf32, #tpu.memory_space<vmem>>, %arg2: memref<8x128xf32, #tpu.memory_space<vmem>>) attributes {dimension_semantics = [#tpu.dimension_semantics<parallel>], iteration_bounds = array<i64: 1>, scalar_prefetch = 0 : i64, scratch_operands = 0 : i64, tpu.core_type = #tpu.core_type<tc>, window_params = [{transform_indices = @transform_0, window_bounds = array<i64: 8, 128>}, {transform_indices = @transform_1, window_bounds = array<i64: 8, 128>}]} {
    %c0 = arith.constant 0 : index
    %c0_0 = arith.constant 0 : index
    %0 = vector.load %arg1[%c0, %c0_0] : memref<8x128xf32, #tpu.memory_space<vmem>>, vector<8x128xf32>
    %1 = arith.mulf %0, %0 : vector<8x128xf32>
    %cst = arith.constant 0.0356774069 : f32
    %2 = vector.broadcast %cst : f32 to vector<8x128xf32>
    %3 = arith.mulf %2, %1 : vector<8x128xf32>
    %cst_1 = arith.constant 0.797884583 : f32
    %4 = vector.broadcast %cst_1 : f32 to vector<8x128xf32>
    %5 = arith.addf %4, %3 : vector<8x128xf32>
    %6 = arith.mulf %0, %5 : vector<8x128xf32>
    %cst_2 = arith.constant 5.000000e-01 : f32
    %7 = vector.broadcast %cst_2 : f32 to vector<8x128xf32>
    %8 = arith.mulf %7, %0 : vector<8x128xf32>
    %9 = math.tanh %6 : vector<8x128xf32>
    %cst_3 = arith.constant 1.000000e+00 : f32
    %10 = vector.broadcast %cst_3 : f32 to vector<8x128xf32>
    %11 = arith.addf %10, %9 : vector<8x128xf32>
    %12 = arith.mulf %8, %11 : vector<8x128xf32>
    %c0_4 = arith.constant 0 : index
    %c0_5 = arith.constant 0 : index
    %13 = vector.load %arg2[%c0_4, %c0_5] : memref<8x128xf32, #tpu.memory_space<vmem>>, vector<8x128xf32>
    tpu.vector_store %arg2[%c0_4, %c0_5], %12 {strides = array<i32>} : memref<8x128xf32, #tpu.memory_space<vmem>>, vector<8x128xf32>,
    return
  }
  func.func @transform_0(%arg0: i32) -> (i32, i32) {
    %c0_i32 = arith.constant 0 : i32
    %c0_i32_0 = arith.constant 0 : i32
    return %arg0, %c0_i32 : i32, i32
  }
  func.func @transform_1(%arg0: i32) -> (i32, i32) {
    %c0_i32 = arith.constant 0 : i32
    %c0_i32_0 = arith.constant 0 : i32
    return %arg0, %c0_i32 : i32, i32
  }
}

</mosaic_0001>

<bundles_post_ra>
// kernel: tpu_custom_call.1
= control target key start
LH: loop header
LB: loop body
LE: loop exit
PB: predicated region body
PF: predicated region fallthrough
CT: control target
= control target key end

     0   :  { %6 = vsyncpa [#allocation3], 0  ;;  %s132_s0 = inlined_call_operand.hbm [shape: f32[4,128], index: 0, kind: input, shape index: {}]   ;;  %s133_s1 = inlined_call_operand.hbm [shape: f32[4,128], index: 1, kind: output, shape index: {}]  }
   0x1   :  { %7 = vsyncpa [#allocation4], 0 }
   0x2   :  { %11 = vsyncadd [#allocation3], 64  ;;  %s12_s8 = sshll.u32 %s132_s0, 4  ;;  %s112_s9 = smov [#allocation2]   ;;  %s13_s8 = int_to_ptr.hbm [resolvable:$true] %s12_s8 }
   0x3   :  { %s14_s10 = sshll.u32 %s112_s9, 4  ;;  %s113_s11 = smov 64   ;;  %s15_s10 = int_to_ptr.vmem [resolvable:$true] %s14_s10 }
   0x4   :  { %s114_s12 = smov 4  }
   0x5   :  { %20 = dma.hbm_to_vmem [thread:$0]  %s13_s8, 64, %s15_s10, [#allocation3], %s113_s11, %s113_s11, %s114_s12  }
   0x6   :  { %108 = dma.done.wait [#allocation3], 128  }
   0x7   :  { %109 = vsyncadd [#allocation3], 4294967168  ;;  %v25_v0 = vld [vmem:[#allocation2] sm:$0xff] }
   0x8   :  { %v26_v1 = vmul.f32 %v25_v0, %v25_v0  ;;  %v30_v5 = vmul.f32 0.5, %v25_v0 }
   0xa   :  { %v27_v2 = vmul.f32 0.035677407, %v26_v1 }
   0xc   :  { %v28_v3 = vadd.f32 0.7978846, %v27_v2 }
   0xe   :  { %v29_v4 = vmul.f32 %v28_v3, %v25_v0 }
  0x10   :  { %58 = vtanh.f32 %v29_v4 }
  0x16   :  { %v59_v6 = vpop.eup %58 }
  0x17   :  { %v32_v7 = vadd.f32 1.0, %v59_v6 }
  0x19   :  { %v33_v8 = vmul.f32 %v32_v7, %v30_v5 }
  0x1b   :  { %34 = vst [vmem:[#allocation5] sm:$0xff] %v33_v8 }
  0x1c   :  { %38 = vsyncadd [#allocation4], 64  ;;  %s41_s14 = sshll.u32 %s133_s1, 4  ;;  %s115_s15 = smov [#allocation5]   ;;  %s42_s14 = int_to_ptr.hbm [resolvable:$true] %s41_s14 }
  0x1d   :  { %s39_s16 = sshll.u32 %s115_s15, 4  ;;  %s40_s16 = int_to_ptr.vmem [resolvable:$true] %s39_s16 }
  0x1e   :  { %47 = dma.vmem_to_hbm [thread:$0]  %s40_s16, 64, %s42_s14, [#allocation4], %s113_s11, %s113_s11, %s114_s12  }
  0x1f   :  { %110 = dma.done.wait [#allocation4], 128  }
  0x20   :  { %111 = vsyncadd [#allocation4], 4294967168 }
  0x21   :  { %52 = vsyncpa [#allocation3], 1 }
  0x22   :  { %53 = vsyncpa [#allocation4], 1 }

</bundles_post_ra>
